<compile_context>
chip_gen: v5e
topology: v5e:2x2
jax: 0.10.0
libtpu: 0.0.40
codegen_flags: <defaults>
</compile_context>

<pallas_src>
import jax
import jax.numpy as jnp
import numpy as np
from jax import lax
from jax.experimental import pallas as pl
from jax.experimental.pallas import tpu as pltpu

_LANES = 128


def value_net_kernel(x_ref, w1_ref, b1_ref, w2_ref, b2_ref, w3_ref, b3_ref, o_ref):
    # x_ref: (TB, in_dim) -- natural HBM layout, batch on sublanes at the block edge.
    x_blk = x_ref[...]
    # fc1 + ReLU: (H, in) . (TB, in)^T -> (H, TB); contraction on both last dims
    # (q @ k^T pattern) so no wrapper-side or in-kernel data transpose is needed.
    h1 = lax.dot_general(
        w1_ref[...], x_blk,
        dimension_numbers=(((1,), (1,)), ((), ())),
        preferred_element_type=jnp.float32)
    h1 = jnp.maximum(h1 + b1_ref[...], 0.0)
    # fc2 + ReLU: (H, H) @ (H, TB) -> (H, TB)  -- batch stays on the lane axis.
    h2 = jnp.dot(w2_ref[...], h1, preferred_element_type=jnp.float32)
    h2 = jnp.maximum(h2 + b2_ref[...], 0.0)
    # fc3 on the MXU: (1, H) @ (H, TB) -> lane-dense (1, TB) value row.
    v = jnp.dot(w3_ref[...], h2, preferred_element_type=jnp.float32) + b3_ref[...]
    o_ref[...] = v.astype(o_ref.dtype)


def value_network_forward(x, params, *, block_batch=16384):
    """x: [B, input_dim] float32 -> [B, 1] float32 (matches ValueNetwork.forward)."""
    B, in_dim = x.shape
    w1, b1 = params["w1"], params["b1"]   # (H, in), (H, 1)
    w2, b2 = params["w2"], params["b2"]   # (H, H), (H, 1)
    w3, b3 = params["w3"], params["b3"]   # (1, H), (1, 1)
    hidden = w1.shape[0]

    # Batch tile: multiple of the 128-lane width, capped by block_batch and by the
    # (lane-rounded) batch.  No HBM pad / transpose of x: grid = cdiv(B, tb) and
    # Pallas masks the ragged tail block automatically.
    b_ceil = pl.cdiv(B, _LANES) * _LANES
    tb = min(int(block_batch), int(b_ceil))
    tb = max(_LANES, (tb // _LANES) * _LANES)
    grid = (pl.cdiv(B, tb),)

    resident = lambda shape: pl.BlockSpec(shape, lambda i: (0, 0))  # stays in VMEM

    flops = 2 * B * (in_dim * hidden + hidden * hidden + hidden)
    bytes_accessed = 4 * (B * in_dim + B                                   # x stream + value row
                          + hidden * in_dim + hidden * hidden + hidden     # weights
                          + 2 * hidden + 1)                                # biases

    out = pl.pallas_call(
        value_net_kernel,
        out_shape=jax.ShapeDtypeStruct((1, B), jnp.float32),
        grid=grid,
        in_specs=[
            pl.BlockSpec((tb, in_dim), lambda i: (i, 0)),   # stream x tiles, natural layout
            resident(w1.shape),
            resident(b1.shape),
            resident(w2.shape),
            resident(b2.shape),
            resident(w3.shape),
            resident(b3.shape),
        ],
        out_specs=pl.BlockSpec((1, tb), lambda i: (0, i)),  # lane-dense output row
        compiler_params=pltpu.CompilerParams(
            dimension_semantics=("parallel",),              # megacore split on v7x
            # 48 MiB: 2x ~8 MiB lane-padded x blocks + two (32, TB) f32 temporaries
            # + double-buffered output row at TB=16384, with headroom under v7x's
            # 64 MiB/TC VMEM; also lifts v5e's 16 MiB default scoped limit.
            vmem_limit_bytes=48 * 1024 * 1024,
        ),
        cost_estimate=pl.CostEstimate(
            flops=flops, transcendentals=0, bytes_accessed=bytes_accessed),
    )(x, w1, b1, w2, b2, w3, b3)

    # (1, B) lane-dense row -> (B, 1) column, matching the PyTorch module's output.
    return out.reshape(B, 1)


def init_params(key, input_dim, hidden_dim):
    """nn.Linear-style uniform(-1/sqrt(fan_in), 1/sqrt(fan_in)) init.

    Weights kept in PyTorch [out, in] layout; biases stored as (out, 1) columns so
    they broadcast over the lane (batch) axis; fc3's weight is the natural (1, H)
    row so it feeds the MXU directly.
    """
    ks = jax.random.split(key, 6)

    def linear(kw, kb, fan_in, fan_out):
        bound = 1.0 / np.sqrt(fan_in)
        w = jax.random.uniform(kw, (fan_out, fan_in), jnp.float32, -bound, bound)
        b = jax.random.uniform(kb, (fan_out, 1), jnp.float32, -bound, bound)
        return w, b

    w1, b1 = linear(ks[0], ks[1], input_dim, hidden_dim)
    w2, b2 = linear(ks[2], ks[3], hidden_dim, hidden_dim)
    w3, b3 = linear(ks[4], ks[5], hidden_dim, 1)           # (1, H), (1, 1)
    return {"w1": w1, "b1": b1, "w2": w2, "b2": b2, "w3": w3, "b3": b3}


def reference_forward(x, p):
    h1 = jnp.maximum(x @ p["w1"].T + p["b1"].T, 0.0)
    h2 = jnp.maximum(h1 @ p["w2"].T + p["b2"].T, 0.0)
    return h2 @ p["w3"].T + p["b3"]   # (B, 1)


if __name__ == "__main__":
    key = jax.random.PRNGKey(0)
    k_params, k_x = jax.random.split(key)

    batch, input_dim, hidden_dim = 200, 16, 32   # B not a multiple of 128 -> ragged tail tile
    params = init_params(k_params, input_dim, hidden_dim)
    x = jax.random.normal(k_x, (batch, input_dim), jnp.float32)

    # block_batch=128 -> grid of 2 steps: exercises tiling, resident weights, and
    # Pallas's automatic handling of the ragged (200 % 128 != 0) tail block.
    out = value_network_forward(x, params, block_batch=128)
    out = jax.block_until_ready(out)

    ref = reference_forward(x, params)
    np.testing.assert_allclose(np.asarray(out), np.asarray(ref), rtol=2e-5, atol=2e-5)
    assert out.shape == (batch, 1)

    print("KERNEL_OK")
</pallas_src>

<mosaic_0001>
module attributes {stable_mosaic.version = 11 : i64} {
  func.func @value_net_kernel(%arg0: i32, %arg1: memref<128x16xf32, #tpu.memory_space<vmem>>, %arg2: memref<32x16xf32, #tpu.memory_space<vmem>>, %arg3: memref<32x1xf32, #tpu.memory_space<vmem>>, %arg4: memref<32x32xf32, #tpu.memory_space<vmem>>, %arg5: memref<32x1xf32, #tpu.memory_space<vmem>>, %arg6: memref<1x32xf32, #tpu.memory_space<vmem>>, %arg7: memref<1x1xf32, #tpu.memory_space<vmem>>, %arg8: memref<1x128xf32, #tpu.memory_space<vmem>>) attributes {dimension_semantics = [#tpu.dimension_semantics<parallel>], iteration_bounds = array<i64: 2>, scalar_prefetch = 0 : i64, scratch_operands = 0 : i64, tpu.core_type = #tpu.core_type<tc>, window_params = [{transform_indices = @transform_0, window_bounds = array<i64: 128, 16>}, {pipeline_mode = #tpu.pipeline_mode<synchronous>, transform_indices = @transform_1, window_bounds = array<i64: 32, 16>}, {pipeline_mode = #tpu.pipeline_mode<synchronous>, transform_indices = @transform_2, window_bounds = array<i64: 32, 1>}, {pipeline_mode = #tpu.pipeline_mode<synchronous>, transform_indices = @transform_3, window_bounds = array<i64: 32, 32>}, {pipeline_mode = #tpu.pipeline_mode<synchronous>, transform_indices = @transform_4, window_bounds = array<i64: 32, 1>}, {pipeline_mode = #tpu.pipeline_mode<synchronous>, transform_indices = @transform_5, window_bounds = array<i64: 1, 32>}, {pipeline_mode = #tpu.pipeline_mode<synchronous>, transform_indices = @transform_6, window_bounds = array<i64: 1, 1>}, {transform_indices = @transform_7, window_bounds = array<i64: 1, 128>}]} {
    %c0 = arith.constant 0 : index
    %c0_0 = arith.constant 0 : index
    %0 = vector.load %arg1[%c0, %c0_0] : memref<128x16xf32, #tpu.memory_space<vmem>>, vector<128x16xf32>
    %c0_1 = arith.constant 0 : index
    %c0_2 = arith.constant 0 : index
    %1 = vector.load %arg2[%c0_1, %c0_2] : memref<32x16xf32, #tpu.memory_space<vmem>>, vector<32x16xf32>
    %cst = arith.constant dense<0.000000e+00> : vector<32x128xf32>
    %2 = tpu.matmul %1, %0, %cst {dimension_numbers = #tpu.dot_dimension_numbers<[1], [1], [0], [0], [0, 0, 1, 0], [], []>} : vector<32x16xf32>, vector<128x16xf32>, vector<32x128xf32> -> vector<32x128xf32>
    %c0_3 = arith.constant 0 : index
    %c0_4 = arith.constant 0 : index
    %3 = vector.load %arg3[%c0_3, %c0_4] : memref<32x1xf32, #tpu.memory_space<vmem>>, vector<32x1xf32>
    %4 = vector.broadcast %3 : vector<32x1xf32> to vector<32x128xf32>
    %5 = arith.addf %2, %4 : vector<32x128xf32>
    %cst_5 = arith.constant 0.000000e+00 : f32
    %6 = vector.broadcast %cst_5 : f32 to vector<32x128xf32>
    %7 = arith.maximumf %5, %6 : vector<32x128xf32>
    %c0_6 = arith.constant 0 : index
    %c0_7 = arith.constant 0 : index
    %8 = vector.load %arg4[%c0_6, %c0_7] : memref<32x32xf32, #tpu.memory_space<vmem>>, vector<32x32xf32>
    %cst_8 = arith.constant dense<0.000000e+00> : vector<32x128xf32>
    %9 = tpu.matmul %8, %7, %cst_8 {dimension_numbers = #tpu.dot_dimension_numbers<[1], [0], [0], [1], [0, 0, 1, 1], [], []>} : vector<32x32xf32>, vector<32x128xf32>, vector<32x128xf32> -> vector<32x128xf32>
    %c0_9 = arith.constant 0 : index
    %c0_10 = arith.constant 0 : index
    %10 = vector.load %arg5[%c0_9, %c0_10] : memref<32x1xf32, #tpu.memory_space<vmem>>, vector<32x1xf32>
    %11 = vector.broadcast %10 : vector<32x1xf32> to vector<32x128xf32>
    %12 = arith.addf %9, %11 : vector<32x128xf32>
    %cst_11 = arith.constant 0.000000e+00 : f32
    %13 = vector.broadcast %cst_11 : f32 to vector<32x128xf32>
    %14 = arith.maximumf %12, %13 : vector<32x128xf32>
    %c0_12 = arith.constant 0 : index
    %c0_13 = arith.constant 0 : index
    %15 = vector.load %arg6[%c0_12, %c0_13] : memref<1x32xf32, #tpu.memory_space<vmem>>, vector<1x32xf32>
    %cst_14 = arith.constant dense<0.000000e+00> : vector<1x128xf32>
    %16 = tpu.matmul %15, %14, %cst_14 {dimension_numbers = #tpu.dot_dimension_numbers<[1], [0], [0], [1], [0, 0, 1, 1], [], []>} : vector<1x32xf32>, vector<32x128xf32>, vector<1x128xf32> -> vector<1x128xf32>
    %c0_15 = arith.constant 0 : index
    %c0_16 = arith.constant 0 : index
    %17 = vector.load %arg7[%c0_15, %c0_16] : memref<1x1xf32, #tpu.memory_space<vmem>>, vector<1x1xf32>
    %18 = vector.broadcast %17 : vector<1x1xf32> to vector<1x128xf32>
    %19 = arith.addf %16, %18 : vector<1x128xf32>
    %c0_17 = arith.constant 0 : index
    %c0_18 = arith.constant 0 : index
    %20 = vector.load %arg8[%c0_17, %c0_18] : memref<1x128xf32, #tpu.memory_space<vmem>>, vector<1x128xf32>
    tpu.vector_store %arg8[%c0_17, %c0_18], %19 {strides = array<i32>} : memref<1x128xf32, #tpu.memory_space<vmem>>, vector<1x128xf32>,
    return
  }
  func.func @transform_0(%arg0: i32) -> (i32, i32) {
    %c0_i32 = arith.constant 0 : i32
    %c0_i32_0 = arith.constant 0 : i32
    return %arg0, %c0_i32 : i32, i32
  }
  func.func @transform_1(%arg0: i32) -> (i32, i32) {
    %c0_i32 = arith.constant 0 : i32
    %c0_i32_0 = arith.constant 0 : i32
    %c0_i32_1 = arith.constant 0 : i32
    return %c0_i32, %c0_i32_0 : i32, i32
  }
  func.func @transform_2(%arg0: i32) -> (i32, i32) {
    %c0_i32 = arith.constant 0 : i32
    %c0_i32_0 = arith.constant 0 : i32
    %c0_i32_1 = arith.constant 0 : i32
    return %c0_i32, %c0_i32_0 : i32, i32
  }
  func.func @transform_3(%arg0: i32) -> (i32, i32) {
    %c0_i32 = arith.constant 0 : i32
    %c0_i32_0 = arith.constant 0 : i32
    %c0_i32_1 = arith.constant 0 : i32
    return %c0_i32, %c0_i32_0 : i32, i32
  }
  func.func @transform_4(%arg0: i32) -> (i32, i32) {
    %c0_i32 = arith.constant 0 : i32
    %c0_i32_0 = arith.constant 0 : i32
    %c0_i32_1 = arith.constant 0 : i32
    return %c0_i32, %c0_i32_0 : i32, i32
  }
  func.func @transform_5(%arg0: i32) -> (i32, i32) {
    %c0_i32 = arith.constant 0 : i32
    %c0_i32_0 = arith.constant 0 : i32
    %c0_i32_1 = arith.constant 0 : i32
    return %c0_i32, %c0_i32_0 : i32, i32
  }
  func.func @transform_6(%arg0: i32) -> (i32, i32) {
    %c0_i32 = arith.constant 0 : i32
    %c0_i32_0 = arith.constant 0 : i32
    %c0_i32_1 = arith.constant 0 : i32
    return %c0_i32, %c0_i32_0 : i32, i32
  }
  func.func @transform_7(%arg0: i32) -> (i32, i32) {
    %c0_i32 = arith.constant 0 : i32
    %c0_i32_0 = arith.constant 0 : i32
    return %c0_i32, %arg0 : i32, i32
  }
}

</mosaic_0001>

<bundles_post_ra>
// kernel: tpu_custom_call.1
= control target key start
LH: loop header
LB: loop body
LE: loop exit
PB: predicated region body
PF: predicated region fallthrough
CT: control target
= control target key end

     0   :  { %s1006_s0 = inlined_call_operand.vmem [shape: f32[200,16], index: 0, kind: input, shape index: {}]   ;;  %s1007_s1 = inlined_call_operand.vmem [shape: f32[32,16], index: 1, kind: input, shape index: {}]   ;;  %s1008_s2 = inlined_call_operand.vmem [shape: f32[32,1], index: 2, kind: input, shape index: {}]   ;;  %s1009_s3 = inlined_call_operand.vmem [shape: f32[32,32], index: 3, kind: input, shape index: {}]   ;;  %s1010_s4 = inlined_call_operand.vmem [shape: f32[32,1], index: 4, kind: input, shape index: {}]   ;;  %s1011_s5 = inlined_call_operand.vmem [shape: f32[1,32], index: 5, kind: input, shape index: {}]   ;;  %s1012_s6 = inlined_call_operand.<no memory space> [shape: f32[1,1], index: 6, kind: input, shape index: {}]   ;;  %s1013_s7 = inlined_call_operand.hbm [shape: f32[1,200], index: 7, kind: output, shape index: {}]  }
   0x1   :  { %v12_v0 = vstv %s1012_s6 }
   0x2   :  { %13 = vst [vmem:[#allocation2] sm:$0x1] %v12_v0 }
   0x3   :  { %14 = vsyncpa [#allocation4], 0 }
   0x4   :  { %16 = vsyncpa [#allocation4 + $0x1], 0  ;;  %s812_s26 = smov 0   ;;  %s814_s27 = smov 0  }
   0x5   :  { %s816_s28 = smov 0   ;;  %s818_s29 = smov 0  }
   0x6 LB: > { %s833_s6 = sadd.s32 4294967295, %s766_s29   ;;  %s612_s30 = sadd.s32 4294967294, %s766_s29   ;;  %s766_s29 = sphi %s818_s29, %s1019_s29   ;;  %s762_s28 = sphi %s816_s28, %s1018_s28   ;;  %s758_s27 = sphi %s814_s27, %s1017_s27   ;;  %s754_s26 = sphi %s812_s26, %s1016_s26  }
   0x7   : > { %s837_s8 = sadd.s32 1, %s766_s29   ;;  %s181_s9 = sadd.s32 1, %s762_s28 }
   0x8   : > { %s178_s10 = ssub.s32 %s766_s29, %s837_s8  ;;  %p191_p0 = scmp.ne.s32.totalorder %s762_s28, %s758_s27 }
   0x9   : > { %p179_p1 = scmp.eq.s32.totalorder %s178_s10, 0  ;;  %p192_p2 = scmp.eq.s32.totalorder %s833_s6, 1 }
   0xa   : > { %p197_p3 = scmp.ne.s32.totalorder %s758_s27, %s754_s26  ;;  %p198_p4 = scmp.eq.s32.totalorder %s612_s30, 1 }
   0xb   : > { %s848_s11 = scalar_select %p179_p1, %s762_s28, %s181_s9  }
   0xc   : > { %p850_p5 = por %p192_p2, %p191_p0  ;;  %p854_p6 = por %p198_p4, %p197_p3 }
   0xd   : > { %p615_p7 = scmp.ge.s32.totalorder %s766_s29, 1  ;;  %p251_p8 = scmp.lt.s32.totalorder %s766_s29, 3 }
   0xf   : > { %p252_p9 = pnand %p615_p7, %p251_p8 }
  0x10   : > { %s616_s14 = sshll.u32 (!%p252_p9), %s833_s6, 4  ;;  %s284_s23 = sand.u32 (!%p252_p9), 1, %s758_s27  }
  0x11   : > { %255 = sbr.rel (%p252_p9) target bundleno = 546 (0x222), region = 48  ;;  %p291_p10 = scmp.lt.s32.totalorder (!%p252_p9), %s616_s14, 24 }
  0x12   : > { %s553_s30 = scalar_lea.hbm (!%p252_p9), %s1013_s7, %s833_s6  ;;  %s285_s9 = scalar_lea.vmem (!%p252_p9), [#allocation3], %s284_s23 }
  0x13   : > { %s555_s10 = sshll.u32 (!%p252_p9), %s285_s9, 4  ;;  %s724_s20 = scalar_lea.hbm (!%p252_p9), %s1013_s7, 2  ;;  %s556_s10 = int_to_ptr.vmem [resolvable:$true] %s555_s10 }
  0x16   : > { %s1021_s14 = smov (!%p291_p10, %s616_s14), 24  ;;  %vm344_vm0 = vcmask 130048   ;;  %v323_v12 = vld [vmem:[%s1008_s2 + $0x18] sm:$0xff]  ;;  %v321_v13 = vld [vmem:[%s1008_s2 + $0x8] sm:$0xff]  ;;  %v768_v15 = vmov 0   ;;  %v322_v17 = vld [vmem:[%s1008_s2 + $0x10] sm:$0xff] }
  0x17   : > { %s617_s15 = sshll.u32 %s1021_s14, 3  ;;  %701 = vset.pattern.permute.xlu0 %v768_v15  ;;  %702 = vset.pattern.permute.xlu1 %v768_v15  ;;  %v320_v18 = vld [vmem:[%s1008_s2] sm:$0xff]  ;;  %v443_v21 = vld [vmem:[%s1010_s4 + $0x8] sm:$0xff]  ;;  %v318_v26 = vld [vmem:[%s1007_s1 + $0x10] sm:$0xff]  ;;  %vm466_vm1 = vcmask 261120   ;;  %s557_s14 = sshll.u32 %s553_s30, 4  ;;  %s558_s14 = int_to_ptr.hbm [resolvable:$true] %s557_s14 }
  0x18   : > { %s864_s18 = scalar_lea.vmem %s1006_s0, %s617_s15  ;;  %341 = vperm.xlu0 %701, %v323_v12   ;;  %331 = vperm.xlu1 %702, %v321_v13   ;;  %v442_v22 = vld [vmem:[%s1010_s4] sm:$0xff]  ;;  %v317_v24 = vld [vmem:[%s1007_s1 + $0x8] sm:$0xff]  ;;  %v319_v27 = vld [vmem:[%s1007_s1 + $0x18] sm:$0xff]  ;;  %s545_s15 = scalar_lea.sflag [#allocation4], %s284_s23 }
  0x19   : > { %v315_v1 = vld [vmem:[%s864_s18 + $0x78] sm:$0xff]  ;;  %v314_v2 = vld [vmem:[%s864_s18 + $0x70] sm:$0xff]  ;;  %v313_v3 = vld [vmem:[%s864_s18 + $0x68] sm:$0xff]  ;;  %703 = vset.pattern.permute.xlu2 %v768_v15  ;;  %s718_s16 = sshra.s32 %s558_s14, 4  ;;  %s719_s16 = int_to_ptr.hbm [resolvable:$true] %s718_s16 }
  0x1a   : > { %645 = vmatpush.xpose.msk.msra.mxu3 %vm344_vm0, %v315_v1  ;;  %618 = vmatpush.xpose.msk.msra.mxu0 %vm344_vm0, %v315_v1  ;;  %v312_v4 = vld [vmem:[%s864_s18 + $0x60] sm:$0xff]  ;;  %v311_v5 = vld [vmem:[%s864_s18 + $0x58] sm:$0xff]  ;;  %v310_v6 = vld [vmem:[%s864_s18 + $0x50] sm:$0xff]  ;;  %s720_s17 = scalar_lea.hbm %s719_s16, 1  ;;  %p725_p0 = scmp.lt.s32.totalorder %s719_s16, %s1013_s7 }
  0x1b   : > { %v309_v7 = vld [vmem:[%s864_s18 + $0x48] sm:$0xff]  ;;  %v308_v8 = vld [vmem:[%s864_s18 + $0x40] sm:$0xff]  ;;  %v307_v9 = vld [vmem:[%s864_s18 + $0x38] sm:$0xff]  ;;  %p721_p11 = scmp.ne.s32.totalorder %s719_s16, %s720_s17  ;;  %p726_p1 = scmp.lt.s32.totalorder %s724_s20, %s720_s17 }
  0x1c   : > { %v306_v10 = vld [vmem:[%s864_s18 + $0x30] sm:$0xff]  ;;  %v305_v11 = vld [vmem:[%s864_s18 + $0x28] sm:$0xff]  ;;  %v304_v14 = vld [vmem:[%s864_s18 + $0x20] sm:$0xff] }
  0x1d   : > { %v303_v16 = vld [vmem:[%s864_s18 + $0x18] sm:$0xff]  ;;  %v302_v19 = vld [vmem:[%s864_s18 + $0x10] sm:$0xff]  ;;  %v301_v20 = vld [vmem:[%s864_s18 + $0x8] sm:$0xff]  ;;  %p722_p12 = pnand %p721_p11, %p850_p5  ;;  %p727_p2 = por %p726_p1, %p725_p0 }
  0x1e   : > { %646 = vmatpush.xpose.msk.msra.mxu3 %vm344_vm0, %v314_v2  ;;  %619 = vmatpush.xpose.msk.msra.mxu0 %vm344_vm0, %v314_v2  ;;  %v300_v23 = vld [vmem:[%s864_s18] sm:$0xff]  ;;  %v445_v40 = vld [vmem:[%s1010_s4 + $0x18] sm:$0xff]  ;;  %v444_v46 = vld [vmem:[%s1010_s4 + $0x10] sm:$0xff] }
  0x1f   : > { %v316_v25 = vld [vmem:[%s1007_s1] sm:$0xff]  ;;  %463 = vperm.xlu2 %703, %v445_v40   ;;  %v439_v47 = vld [vmem:[%s1009_s3 + $0x8] sm:$0xff]  ;;  %v440_v49 = vld [vmem:[%s1009_s3 + $0x10] sm:$0xff]  ;;  %p723_p13 = pneg %p722_p12 }
  0x20   : > { %336 = vperm.xlu0 %701, %v322_v17   ;;  %326 = vperm.xlu1 %702, %v320_v18   ;;  %v438_v45 = vld [vmem:[%s1009_s3] sm:$0xff]  ;;  %v441_v50 = vld [vmem:[%s1009_s3 + $0x18] sm:$0xff] }
  0x21   : > { %v513_v48 = vld [vmem:[#allocation2] sm:$0x1]  ;;  %p728_p3 = pnand %p727_p2, %p723_p13 }
  0x22   : > { %647 = vmatpush.xpose.msk.msra.mxu3 %vm344_vm0, %v313_v3  ;;  %620 = vmatpush.xpose.msk.msra.mxu0 %vm344_vm0, %v313_v3  ;;  %v512_v3 = vld [vmem:[%s1011_s5] sm:$0x1] }
  0x26   : > { %648 = vmatpush.xpose.msk.msra.mxu3 %vm344_vm0, %v312_v4  ;;  %621 = vmatpush.xpose.msk.msra.mxu0 %vm344_vm0, %v312_v4 }
  0x27   : > { %458 = vperm.xlu2 %703, %v444_v46  }
  0x28   : > { %453 = vperm.xlu0 %701, %v443_v21   ;;  %448 = vperm.xlu1 %702, %v442_v22  }
  0x2a   : > { %649 = vmatpush.xpose.msk.msra.mxu3 %vm344_vm0, %v311_v5  ;;  %622 = vmatpush.xpose.msk.msra.mxu0 %vm344_vm0, %v311_v5 }
  0x2e   : > { %650 = vmatpush.xpose.msk.msra.mxu3 %vm344_vm0, %v310_v6  ;;  %623 = vmatpush.xpose.msk.msra.mxu0 %vm344_vm0, %v310_v6 }
  0x2f   : > { %516 = vperm.xlu2 %703, %v513_v48  }
  0x32   : > { %651 = vmatpush.xpose.msk.msra.mxu3 %vm344_vm0, %v309_v7  ;;  %624 = vmatpush.xpose.msk.msra.mxu0 %vm344_vm0, %v309_v7 }
  0x36   : > { %652 = vmatpush.xpose.msk.msra.mxu3 %vm344_vm0, %v308_v8  ;;  %625 = vmatpush.xpose.msk.msra.mxu0 %vm344_vm0, %v308_v8 }
  0x3a   : > { %653 = vmatpush.xpose.msk.msra.mxu3 %vm344_vm0, %v307_v9  ;;  %626 = vmatpush.xpose.msk.msra.mxu0 %vm344_vm0, %v307_v9 }
  0x3e   : > { %654 = vmatpush.xpose.msk.msra.mxu3 %vm344_vm0, %v306_v10  ;;  %627 = vmatpush.xpose.msk.msra.mxu0 %vm344_vm0, %v306_v10 }
  0x42   : > { %655 = vmatpush.xpose.msk.msra.mxu3 %vm344_vm0, %v305_v11  ;;  %628 = vmatpush.xpose.msk.msra.mxu0 %vm344_vm0, %v305_v11 }
  0x46   : > { %656 = vmatpush.xpose.msk.msra.mxu3 %vm344_vm0, %v304_v14  ;;  %629 = vmatpush.xpose.msk.msra.mxu0 %vm344_vm0, %v304_v14 }
  0x4a   : > { %657 = vmatpush.xpose.msk.msra.mxu3 %vm344_vm0, %v303_v16  ;;  %630 = vmatpush.xpose.msk.msra.mxu0 %vm344_vm0, %v303_v16 }
  0x4e   : > { %658 = vmatpush.xpose.msk.msra.mxu3 %vm344_vm0, %v302_v19  ;;  %631 = vmatpush.xpose.msk.msra.mxu0 %vm344_vm0, %v302_v19 }
  0x52   : > { %659 = vmatpush.xpose.msk.msra.mxu3 %vm344_vm0, %v301_v20  ;;  %632 = vmatpush.xpose.msk.msra.mxu0 %vm344_vm0, %v301_v20 }
  0x56   : > { %660 = vmatpush.xpose.msk.msra.mxu3 %vm344_vm0, %v300_v23  ;;  %633 = vmatpush.xpose.msk.msra.mxu0 %vm344_vm0, %v300_v23 }
  0x59   : > { %635 = vmatmul.msk.f32.vlgmr.msra.gmra.mxu3 %vm344_vm0, %v317_v24  ;;  %634 = vmatmul.msk.f32.vlgmr.msra.gmra.mxu0 %vm344_vm0, %v316_v25 }
  0x61   : > { %636 = vmatmul.msk.f32.gmra.mxu3 %vm344_vm0, %v318_v26 }
  0x69   : > { %637 = vmatmul.msk.f32.gmra.mxu3 %vm344_vm0, %v319_v27 }
  0x79   : > { %v464_v53 = vpop.permute.xlu2 %463 }
  0x81   : > { %v459_v55 = vpop.permute.xlu2 %458 }
  0x89   : > { %v517_v4 = vpop.permute.xlu2 %516 }
  0x8a   : > { %v342_v29 = vpop.permute.xlu0 %341  ;;  %v332_v31 = vpop.permute.xlu1 %331  ;;  %v519_v5 = vperm.slane %v517_v4, 0 }
  0x92   : > { %v337_v32 = vpop.permute.xlu0 %336  ;;  %v327_v39 = vpop.permute.xlu1 %326 }
  0x9a   : > { %v454_v59 = vpop.permute.xlu0 %453  ;;  %v449_v62 = vpop.permute.xlu1 %448 }
  0xd6   : > { %v422_v36 = vpop.f32.mrf.mxu0 }
  0xd7   : > { %v423_v42 = vadd.f32 %v422_v36, %v327_v39 }
  0xd9   : > { %v434_v44 = vmax.f32 %v423_v42, 0.0 }
  0xdc   : > { %v425_v28 = vpop.f32.mrf.mxu3 }
  0xdd   : > { %v426_v37 = vadd.f32 %v425_v28, %v332_v31 }
  0xdf   : > { %v435_v43 = vmax.f32 %v426_v37, 0.0 }
  0xe4   : > { %v428_v30 = vpop.f32.mrf.mxu3 }
  0xe5   : > { %v429_v34 = vadd.f32 %v428_v30, %v337_v32 }
  0xe7   : > { %v436_v41 = vmax.f32 %v429_v34, 0.0 }
  0xec   : > { %v431_v33 = vpop.f32.mrf.mxu3 }
  0xed   : > { %v432_v35 = vadd.f32 %v431_v33, %v342_v29 }
  0xef   : > { %v437_v38 = vmax.f32 %v432_v35, 0.0 }
  0xf1   : > { %491 = vmatpush.msra.mxu1 %v437_v38 }
  0xf3   : > { %492 = vmatpush.msra.mxu1 %v436_v41 }
  0xf5   : > { %493 = vmatpush.msra.mxu1 %v435_v43 }
  0xf7   : > { %494 = vmatpush.msra.mxu1 %v434_v44 }
  0xf8   : > { %638 = vmatmul.msk.f32.vlgmr.msra.gmra.mxu1 %vm466_vm1, %v438_v45 }
 0x100   : > { %639 = vmatmul.msk.f32.gmra.mxu1 %vm466_vm1, %v439_v47 }
 0x108   : > { %640 = vmatmul.msk.f32.gmra.mxu1 %vm466_vm1, %v440_v49 }
 0x110   : > { %641 = vmatmul.msk.f32.gmra.mxu1 %vm466_vm1, %v441_v50 }
 0x175   : > { %v496_v51 = vpop.f32.mrf.mxu1 }
 0x176   : > { %v497_v63 = vadd.f32 %v496_v51, %v449_v62 }
 0x178   : > { %v508_v2 = vmax.f32 %v497_v63, 0.0 }
 0x17d   : > { %v499_v52 = vpop.f32.mrf.mxu1 }
 0x17e   : > { %v500_v60 = vadd.f32 %v499_v52, %v454_v59 }
 0x180   : > { %v509_v1 = vmax.f32 %v500_v60, 0.0 }
 0x185   : > { %v502_v54 = vpop.f32.mrf.mxu1 }
 0x186   : > { %v503_v57 = vadd.f32 %v502_v54, %v459_v55 }
 0x188   : > { %v510_v0 = vmax.f32 %v503_v57, 0.0 }
 0x18d   : > { %v505_v56 = vpop.f32.mrf.mxu1 }
 0x18e   : > { %v506_v58 = vadd.f32 %v505_v56, %v464_v53 }
 0x190   : > { %v511_v61 = vmax.f32 %v506_v58, 0.0 }
 0x192   : > { %535 = vmatpush.msra.mxu2 %v511_v61 }
 0x194   : > { %536 = vmatpush.msra.mxu2 %v510_v0 }
 0x196   : > { %537 = vmatpush.msra.mxu2 %v509_v1 }
 0x198   : > { %538 = vmatpush.msra.mxu2 %v508_v2 }
 0x199   : > { %642 = vmatmul.msk.f32.vlgmr.msra.gmra.mxu2 %vm466_vm1, %v512_v3 }
 0x21c   : > { %v540_v6 = vpop.f32.mrf.mxu2 }
 0x21d   : > { %v541_v7 = vadd.f32 %v540_v6, %v519_v5 }
 0x21f   : > { %543 = vst [vmem:[%s285_s9] sm:$0x1] %v541_v7 }
 0x220   : > { %731 = shalt.err (!%p728_p3)
}
 0x221   : > { %661 = dma.vmem_to_hbm [thread:$0]  (%p850_p5), %s556_s10, 16, %s558_s14, %s545_s15  }
 0x222 PF: > { %p667_p4 = scmp.ge.s32.totalorder %s766_s29, 2  ;;  %s569_s22 = sand.u32 1, %s754_s26  }
 0x223   : > { %s570_s23 = scalar_lea.sflag [#allocation4], %s569_s22 }
 0x224   : > { %p664_p7 = pnand %p667_p4, %p854_p6 }
 0x226   : > { %p665_p8 = pneg %p664_p7 }
 0x228   : > { %749 = dma.done.wait (%p665_p8), %s570_s23, 16  }
 0x229   : > { %751 = vsyncadd (%p665_p8), %s570_s23, 4294967280  ;;  %p19_p9 = scmp.ge.s32.totalorder %s837_s8, 4   ;;  %s1016_s26 = smov %s758_s27 }
 0x22a   : > { %s1017_s27 = smov %s762_s28  ;;  %s1018_s28 = smov %s848_s11 }
 0x22b   : > { %s1019_s29 = smov %s837_s8  ;;  %21 = sbr.rel (!%p19_p9) target bundleno = 6 (0x6), region = 83 }
 0x230   :  { %575 = vsyncpa [#allocation4], 1 }
 0x231   :  { %577 = vsyncpa [#allocation4 + $0x1], 1 }

</bundles_post_ra>
